<compile_context>
chip_gen: v5e
topology: v5e:2x2
jax: 0.10.0
libtpu: 0.0.40
codegen_flags: <defaults>
</compile_context>

<pallas_src>
import jax
import jax.numpy as jnp
from jax.experimental import pallas as pl
from jax.experimental.pallas import tpu as pltpu


def apply_style_kernel(scale_ref, shift_ref, x_ref, out_ref):
    """out = x * scale + shift  (scale/shift broadcast over the lane axis).

    scale_ref: (TR, 1)  f32  (already includes the +1.0)
    shift_ref: (TR, 1)  f32
    x_ref:     (TR, TL)
    out_ref:   (TR, TL)
    """
    out_ref[...] = (x_ref[...] * scale_ref[...] + shift_ref[...]).astype(out_ref.dtype)


def _tpu_budgets():
    """(per-block byte target, vmem_limit_bytes) based on detected VMEM size."""
    cap = 64 << 20  # assume the most constrained (v7x) if detection fails
    try:
        info = pltpu.get_tpu_info()
        cap = int(getattr(info, "vmem_capacity_bytes", cap))
    except Exception:
        pass
    if cap >= (100 << 20):          # v5e / v6e: 128 MiB physical VMEM
        return 8 << 20, 64 << 20
    return 5 << 20, 48 << 20        # v7x (64 MiB) or unknown


def _pick_block(rows, hw, itemsize, target_bytes, max_rows=2048, max_lanes=32768):
    """Pick a (tr, tl) block: lane-dense, dtype-aware, ~target_bytes per block.

    tr is a multiple of the sublane-packing granularity (8/16/32 for 4/2/1-byte
    dtypes) unless it covers all rows; tl is either the full HW or a large
    multiple of 128.  Partial trailing blocks are handled by cdiv grids.
    """
    row_align = max(8, 32 // max(1, itemsize))
    lane = 128

    # Lane (HW) tile.
    if hw <= lane or hw * itemsize * row_align <= target_bytes:
        tl = hw                                      # full rows fit comfortably
    else:
        tl = (target_bytes // (row_align * itemsize)) // lane * lane
        tl = max(lane, min(tl, max_lanes, (hw // lane) * lane))

    # Row tile: fill the byte target given tl lanes.
    tr = (target_bytes // max(1, tl * itemsize)) // row_align * row_align
    tr = max(row_align, min(tr, max_rows))
    if tr >= rows:
        tr = rows                                    # full-dim block: always layout-legal
    return tr, tl


def apply_style(x_nchw, latent, weight, bias, block_override=None):
    """x_nchw: (B, C, H, W); latent: (B, L); weight: (2C, L) torch layout; bias: (2C,)."""
    B, C, H, W = x_nchw.shape
    HW = H * W
    R = B * C
    itemsize = jnp.dtype(x_nchw.dtype).itemsize

    # Split the torch Linear into scale/shift halves; fold the "+1.0" into the
    # scale bias.  This tiny (B,L)x(L,C) matmul stays in plain XLA.
    w_scale = weight[:C, :].T                         # (L, C)
    w_shift = weight[C:, :].T                         # (L, C)
    b_scale = bias[:C].astype(jnp.float32) + 1.0
    b_shift = bias[C:].astype(jnp.float32)

    lat32 = latent.astype(jnp.float32)
    scale = (lat32 @ w_scale.astype(jnp.float32) + b_scale).reshape(R, 1)   # (B*C, 1)
    shift = (lat32 @ w_shift.astype(jnp.float32) + b_shift).reshape(R, 1)   # (B*C, 1)

    x = x_nchw.reshape(R, HW)                         # rows packed as b*C + c

    target_bytes, vmem_limit = _tpu_budgets()
    if block_override is not None:
        tr, tl = block_override
    else:
        tr, tl = _pick_block(R, HW, itemsize, target_bytes)

    grid = (pl.cdiv(R, tr), pl.cdiv(HW, tl))          # HW innermost so scale/shift tiles are reused

    out = pl.pallas_call(
        apply_style_kernel,
        out_shape=jax.ShapeDtypeStruct((R, HW), x.dtype),
        grid_spec=pltpu.PrefetchScalarGridSpec(
            num_scalar_prefetch=0,
            grid=grid,
            in_specs=[
                pl.BlockSpec((tr, 1), lambda i, j: (i, 0)),    # scale column (j-invariant)
                pl.BlockSpec((tr, 1), lambda i, j: (i, 0)),    # shift column (j-invariant)
                pl.BlockSpec((tr, tl), lambda i, j: (i, j)),   # x tile
            ],
            out_specs=pl.BlockSpec((tr, tl), lambda i, j: (i, j)),
        ),
        compiler_params=pltpu.CompilerParams(
            dimension_semantics=("parallel", "parallel"),      # tiles independent -> megacore-safe
            vmem_limit_bytes=vmem_limit,
        ),
        cost_estimate=pl.CostEstimate(
            flops=2 * R * HW,
            transcendentals=0,
            bytes_accessed=2 * R * HW * itemsize + 2 * R * 4,
        ),
    )(scale, shift, x)

    return out.reshape(B, C, H, W)


def apply_style_ref(x_nchw, latent, weight, bias):
    """Pure-JAX reference matching the PyTorch forward."""
    B, C, H, W = x_nchw.shape
    style = latent @ weight.T + bias                   # (B, 2C)
    style = style.reshape(B, 2, C, 1, 1)
    return x_nchw * (style[:, 0] + 1.0) + style[:, 1]


if __name__ == "__main__":
    key = jax.random.PRNGKey(0)

    # --- Test 1: small shapes consistent with the module (auto block policy). ---
    B, C, H, W = 2, 4, 16, 16
    latent_size = 32
    kx, kl, kw, kb, key = jax.random.split(key, 5)
    x = jax.random.normal(kx, (B, C, H, W), dtype=jnp.float32)
    latent = jax.random.normal(kl, (B, latent_size), dtype=jnp.float32)
    weight = 0.1 * jax.random.normal(kw, (2 * C, latent_size), dtype=jnp.float32)
    bias = 0.1 * jax.random.normal(kb, (2 * C,), dtype=jnp.float32)

    out = jax.block_until_ready(apply_style(x, latent, weight, bias))
    ref = apply_style_ref(x, latent, weight, bias)
    assert out.shape == (B, C, H, W)
    assert jnp.allclose(out, ref, atol=1e-5, rtol=1e-5), "mismatch vs reference (test 1)"

    # --- Test 2: awkward sizes + forced small blocks to exercise the cdiv /
    #     partial-trailing-block path in both grid axes. ---
    B2, C2, H2, W2 = 2, 5, 10, 20                      # R=10 (not /8), HW=200 (not /128)
    kx2, kl2, kw2, kb2, key = jax.random.split(key, 5)
    x2 = jax.random.normal(kx2, (B2, C2, H2, W2), dtype=jnp.float32)
    latent2 = jax.random.normal(kl2, (B2, latent_size), dtype=jnp.float32)
    weight2 = 0.1 * jax.random.normal(kw2, (2 * C2, latent_size), dtype=jnp.float32)
    bias2 = 0.1 * jax.random.normal(kb2, (2 * C2,), dtype=jnp.float32)

    out2 = jax.block_until_ready(
        apply_style(x2, latent2, weight2, bias2, block_override=(8, 128)))
    ref2 = apply_style_ref(x2, latent2, weight2, bias2)
    assert out2.shape == (B2, C2, H2, W2)
    assert jnp.allclose(out2, ref2, atol=1e-5, rtol=1e-5), "mismatch vs reference (test 2)"

    print("KERNEL_OK")
</pallas_src>

<mosaic_0001>
module attributes {stable_mosaic.version = 11 : i64} {
  func.func @apply_style_kernel(%arg0: i32, %arg1: i32, %arg2: memref<8x1xf32, #tpu.memory_space<vmem>>, %arg3: memref<8x1xf32, #tpu.memory_space<vmem>>, %arg4: memref<8x256xf32, #tpu.memory_space<vmem>>, %arg5: memref<8x256xf32, #tpu.memory_space<vmem>>) attributes {dimension_semantics = [#tpu.dimension_semantics<parallel>, #tpu.dimension_semantics<parallel>], iteration_bounds = array<i64: 1, 1>, scalar_prefetch = 0 : i64, scratch_operands = 0 : i64, tpu.core_type = #tpu.core_type<tc>, window_params = [{transform_indices = @transform_0, window_bounds = array<i64: 8, 1>}, {transform_indices = @transform_1, window_bounds = array<i64: 8, 1>}, {transform_indices = @transform_2, window_bounds = array<i64: 8, 256>}, {transform_indices = @transform_3, window_bounds = array<i64: 8, 256>}]} {
    %c0 = arith.constant 0 : index
    %c0_0 = arith.constant 0 : index
    %0 = vector.load %arg4[%c0, %c0_0] : memref<8x256xf32, #tpu.memory_space<vmem>>, vector<8x256xf32>
    %c0_1 = arith.constant 0 : index
    %c0_2 = arith.constant 0 : index
    %1 = vector.load %arg2[%c0_1, %c0_2] : memref<8x1xf32, #tpu.memory_space<vmem>>, vector<8x1xf32>
    %2 = vector.broadcast %1 : vector<8x1xf32> to vector<8x256xf32>
    %3 = arith.mulf %0, %2 : vector<8x256xf32>
    %c0_3 = arith.constant 0 : index
    %c0_4 = arith.constant 0 : index
    %4 = vector.load %arg3[%c0_3, %c0_4] : memref<8x1xf32, #tpu.memory_space<vmem>>, vector<8x1xf32>
    %5 = vector.broadcast %4 : vector<8x1xf32> to vector<8x256xf32>
    %6 = arith.addf %3, %5 : vector<8x256xf32>
    %c0_5 = arith.constant 0 : index
    %c0_6 = arith.constant 0 : index
    %7 = vector.load %arg5[%c0_5, %c0_6] : memref<8x256xf32, #tpu.memory_space<vmem>>, vector<8x256xf32>
    tpu.vector_store %arg5[%c0_5, %c0_6], %6 {strides = array<i32>} : memref<8x256xf32, #tpu.memory_space<vmem>>, vector<8x256xf32>,
    return
  }
  func.func @transform_0(%arg0: i32, %arg1: i32) -> (i32, i32) {
    %c0_i32 = arith.constant 0 : i32
    %c0_i32_0 = arith.constant 0 : i32
    return %arg0, %c0_i32 : i32, i32
  }
  func.func @transform_1(%arg0: i32, %arg1: i32) -> (i32, i32) {
    %c0_i32 = arith.constant 0 : i32
    %c0_i32_0 = arith.constant 0 : i32
    return %arg0, %c0_i32 : i32, i32
  }
  func.func @transform_2(%arg0: i32, %arg1: i32) -> (i32, i32) {
    %c0_i32 = arith.constant 0 : i32
    return %arg0, %arg1 : i32, i32
  }
  func.func @transform_3(%arg0: i32, %arg1: i32) -> (i32, i32) {
    %c0_i32 = arith.constant 0 : i32
    return %arg0, %arg1 : i32, i32
  }
}

</mosaic_0001>

<bundles_post_ra>
// kernel: tpu_custom_call.1
= control target key start
LH: loop header
LB: loop body
LE: loop exit
PB: predicated region body
PF: predicated region fallthrough
CT: control target
= control target key end

     0   :  { %s117_s0 = inlined_call_operand.vmem [shape: f32[8,1], index: 0, kind: input, shape index: {}]   ;;  %s118_s1 = inlined_call_operand.vmem [shape: f32[8,1], index: 1, kind: input, shape index: {}]   ;;  %s119_s2 = inlined_call_operand.vmem [shape: f32[8,256], index: 2, kind: input, shape index: {}]   ;;  %s120_s3 = inlined_call_operand.hbm [shape: f32[8,256], index: 3, kind: output, shape index: {}]  }
   0x1   :  { %v17_v0 = vld [vmem:[%s117_s0] sm:$0xff] }
   0x2   :  { %8 = vsyncpa [#allocation3], 0  ;;  %v80_v1 = vmov 0   ;;  %v25_v2 = vld [vmem:[%s118_s1] sm:$0xff]  ;;  %v16_v5 = vld [vmem:[%s119_s2 + $0x8] sm:$0xff]  ;;  %s81_s0 = smov [#allocation2]  }
   0x3   :  { %53 = vset.pattern.permute.xlu0 %v80_v1  ;;  %v15_v4 = vld [vmem:[%s119_s2] sm:$0xff]  ;;  %s40_s20 = sshll.u32 %s81_s0, 4  ;;  %s42_s23 = sshll.u32 %s120_s3, 4  ;;  %s41_s20 = int_to_ptr.vmem [resolvable:$true] %s40_s20  ;;  %s43_s23 = int_to_ptr.hbm [resolvable:$true] %s42_s23 }
   0x4   :  { %20 = vperm.xlu0 %53, %v17_v0  }
   0xc   :  { %28 = vperm.xlu0 %53, %v25_v2  }
  0x76   :  { %v21_v3 = vpop.permute.xlu0 %20 }
  0x77   :  { %v23_v6 = vmul.f32 %v21_v3, %v15_v4  ;;  %v24_v7 = vmul.f32 %v21_v3, %v16_v5 }
  0x7e   :  { %v29_v8 = vpop.permute.xlu0 %28 }
  0x7f   :  { %v31_v9 = vadd.f32 %v29_v8, %v23_v6  ;;  %v32_v10 = vadd.f32 %v29_v8, %v24_v7 }
  0x81   :  { %33 = vst [vmem:[#allocation2] sm:$0xff] %v31_v9 }
  0x82   :  { %34 = vst [vmem:[#allocation2 + $0x8] sm:$0xff] %v32_v10 }
  0x83   :  { %45 = dma.vmem_to_hbm [thread:$0]  %s41_s20, 256, %s43_s23, [#allocation3]  }
  0x84   :  { %78 = dma.done.wait [#allocation3], 256  }
  0x85   :  { %79 = vsyncadd [#allocation3], 4294967040 }
  0x86   :  { %50 = vsyncpa [#allocation3], 1 }

</bundles_post_ra>
